<compile_context>
chip_gen: v7x
topology: tpu7x:2x2x1
jax: 0.10.0
libtpu: 0.0.40
codegen_flags: <defaults>
</compile_context>

<pallas_src>
import numpy as np
import jax
import jax.numpy as jnp
from jax import lax
from jax.experimental import pallas as pl
from jax.experimental.pallas import tpu as pltpu


# 3x3 taps in row-major (kh, kw) order; source offset (di, dj) = (kh-1, kw-1).
_TAPS = tuple((kh, kw) for kh in range(3) for kw in range(3))

_ROLL_IS_NUMPY_LIKE = None


def _roll_is_numpy_like():
    """Probe pltpu.roll's rotation convention once on-device.

    True  -> pltpu.roll(x, k, ax) == np.roll(x, k, ax)  (element i -> i+k)
    False -> opposite convention (out[i] = in[i+k]).
    """
    global _ROLL_IS_NUMPY_LIKE
    if _ROLL_IS_NUMPY_LIKE is None:
        def probe(x_ref, o_ref):
            o_ref[...] = pltpu.roll(x_ref[...], 1, 1)
        x = jnp.broadcast_to(jnp.arange(128, dtype=jnp.float32)[None, :], (8, 128))
        y = pl.pallas_call(
            probe, out_shape=jax.ShapeDtypeStruct((8, 128), jnp.float32))(x)
        _ROLL_IS_NUMPY_LIKE = bool(np.asarray(jax.device_get(y))[0, 1] == 0.0)
    return _ROLL_IS_NUMPY_LIKE


def _build_tap_masks(H, W):
    """(9, 1, HW) 0/1 masks: source pixel of tap t is inside the image."""
    HW = H * W
    m = np.zeros((9, 1, HW), np.float32)
    for t, (kh, kw) in enumerate(_TAPS):
        di, dj = kh - 1, kw - 1
        for i in range(H):
            for j in range(W):
                if 0 <= i + di < H and 0 <= j + dj < W:
                    m[t, 0, i * W + j] = 1.0
    return m


def _pick_bt(B, C):
    """Samples folded per block so BT*C fills the 8-sublane vregs (if possible)."""
    for bt in range(1, B + 1):
        if B % bt == 0 and (bt * C) % 8 == 0:
            return bt
    return 1


# ----------------------------------------------------------------------------
# fused Pallas kernel: one grid step == BT folded batch samples
# ----------------------------------------------------------------------------
def _make_kernel(W, HW, roll_numpy_like):
    def kernel(x_ref, obst_ref, obsb_ref, mt_ref, mb_ref, masks_ref,
               philhs_ref, vjplhs_ref, ganlhs_ref, consts_ref, sel_ref,
               out_ref):
        f32 = jnp.float32
        x = x_ref[...]                      # (R, HW)
        obs_t = obst_ref[...]               # first-C obs channels per sample
        obs_b = obsb_ref[...]               # second-C obs channels per sample
        m_t = mt_ref[...]
        m_b = mb_ref[...]
        consts = consts_ref[...]            # (R, 4)
        bphi = consts[:, 0:1]
        bgan = consts[:, 1:2]
        gs_t = consts[:, 2:3]
        gs_b = consts[:, 3:4]
        tap_mask = [masks_ref[t] for t in range(9)]     # each (1, HW)

        def conv_taps(arr):
            # zero-padded 3x3 SAME-conv source shifts of `arr`, tap-major.
            outs = []
            for t, (kh, kw) in enumerate(_TAPS):
                s = (kh - 1) * W + (kw - 1)
                if s == 0:
                    outs.append(arr)
                else:
                    amt = (-s) % HW if roll_numpy_like else s % HW
                    outs.append(pltpu.roll(arr, amt, 1) * tap_mask[t])
            return outs

        # ---- phi_r: fused 3x3 conv -> one (R,9R)@(9R,HW) MXU dot ----
        xs_cat = jnp.concatenate(conv_taps(x), axis=0)
        pred = jnp.dot(philhs_ref[...], xs_cat, preferred_element_type=f32) + bphi

        # ---- model_H: dy = (concat([xb, pred]) - obs) * mask ----
        dy_t = (x - obs_t) * m_t
        dy_b = (pred - obs_b) * m_b

        # ---- analytic grad of the weighted-L2 variational cost wrt xb ----
        # dLoss/d(xcat) = gscale * dy * mask ; pred-half flows back through the
        # transposed 3x3 conv of phi_r (flipped taps, swapped in/out channels).
        g_t = gs_t * dy_t * m_t
        g_b = gs_b * dy_b * m_b
        gb_cat = jnp.concatenate(conv_taps(g_b), axis=0)
        vgrad = g_t + jnp.dot(vjplhs_ref[...], gb_cat, preferred_element_type=f32)

        # ---- pseudo observations: mask*obs + (1-mask)*concat([xb, pred]) ----
        obs2_t = m_t * obs_t + (1.0 - m_t) * x
        obs2_b = m_b * obs_b + (1.0 - m_b) * pred

        # ---- m_GAN: fused 3x3 conv over 5C channels -> (R,45R)@(45R,HW) ----
        gan_in = jnp.concatenate([x, pred, obs2_t, obs2_b, vgrad], axis=0)
        gi_cat = jnp.concatenate(conv_taps(gan_in), axis=0)
        x_inc = jnp.dot(ganlhs_ref[...], gi_cat, preferred_element_type=f32) + bgan

        # ---- per-sample scaling: sum(dy[:,0]^2) / count_nonzero(mask[:,0]) ----
        # sel broadcasts each sample's channel-0 row over its C rows.  An
        # all-zero channel-0 mask gives inf/NaN, the same hazard as the module.
        num = jnp.sum(jnp.dot(sel_ref[...], dy_t * dy_t,
                              preferred_element_type=f32),
                      axis=1, keepdims=True)
        den = jnp.sum(jnp.dot(sel_ref[...], (m_t != 0.0).astype(f32),
                              preferred_element_type=f32),
                      axis=1, keepdims=True)
        out_ref[...] = x + x_inc * (num / den)

    return kernel


# ----------------------------------------------------------------------------
# wrapper: weight fusion / batch folding + pallas_call
# ----------------------------------------------------------------------------
def solver_4dvar_gan_forward(xb, obs, mask, params):
    B, C, H, W = xb.shape
    HW = H * W
    BT = _pick_bt(B, C)          # samples folded per block
    G = B // BT                  # grid size
    R = BT * C                   # sublane rows per block

    w_phi = jnp.asarray(params["w_phi"], jnp.float32)    # (C, C, 3, 3)
    b_phi = jnp.asarray(params["b_phi"], jnp.float32)    # (C,)
    w_gan = jnp.asarray(params["w_gan"], jnp.float32)    # (C, 5C, 3, 3)
    b_gan = jnp.asarray(params["b_gan"], jnp.float32)    # (C,)
    alpha_obs = params["alpha_obs"]
    W_obs = params["W_obs"]                               # (1, 2C)

    eye_bt = jnp.eye(BT, dtype=jnp.float32)

    def kron_block(w2d):          # (C, Cin) -> (BT*C, BT*Cin) block-diagonal
        return jnp.kron(eye_bt, w2d)

    # fused per-tap weight LHS matrices (taps stacked along the contraction K)
    phi_lhs = jnp.concatenate(
        [kron_block(w_phi[:, :, kh, kw]) for (kh, kw) in _TAPS], axis=1)
    vjp_lhs = jnp.concatenate(
        [kron_block(w_phi[:, :, 2 - kh, 2 - kw].T) for (kh, kw) in _TAPS], axis=1)
    gan_lhs = jnp.concatenate(
        [jnp.concatenate(
            [kron_block(w_gan[:, g * C:(g + 1) * C, kh, kw]) for g in range(5)],
            axis=1)
         for (kh, kw) in _TAPS], axis=1)

    # per-channel constants folded over the BT samples of a block:
    # dLoss/d(dy) scale: 2 * alphaObs^2 * WObs^2 / (B*H*W)   (finite inputs)
    gscale = (2.0 * alpha_obs ** 2 / (B * H * W)) * (W_obs[0] ** 2)     # (2C,)
    consts = jnp.stack(
        [jnp.tile(b_phi, BT), jnp.tile(b_gan, BT),
         jnp.tile(gscale[:C], BT), jnp.tile(gscale[C:], BT)],
        axis=1).astype(jnp.float32)                                      # (R, 4)

    # (R, R) selector: broadcasts each sample's channel-0 row over its C rows
    e0 = jnp.zeros((1, C), jnp.float32).at[0, 0].set(1.0)
    sel = jnp.kron(eye_bt, jnp.ones((C, 1), jnp.float32) @ e0)

    tap_masks = jnp.asarray(_build_tap_masks(H, W))                      # (9,1,HW)

    xb_f = xb.reshape(G, R, HW)
    obs_t = obs[:, :C].reshape(G, R, HW)
    obs_b = obs[:, C:].reshape(G, R, HW)
    msk_t = mask[:, :C].reshape(G, R, HW)
    msk_b = mask[:, C:].reshape(G, R, HW)

    kernel = _make_kernel(W, HW, _roll_is_numpy_like())

    data_spec = pl.BlockSpec((None, R, HW), lambda b: (b, 0, 0))

    def full_spec(shape):
        return pl.BlockSpec(shape, lambda b: (0,) * len(shape))

    out = pl.pallas_call(
        kernel,
        out_shape=jax.ShapeDtypeStruct((G, R, HW), jnp.float32),
        grid_spec=pltpu.PrefetchScalarGridSpec(
            num_scalar_prefetch=0,
            grid=(G,),
            in_specs=[
                data_spec,                      # xb (folded)
                data_spec, data_spec,           # obs top / bottom channel halves
                data_spec, data_spec,           # mask top / bottom halves
                full_spec((9, 1, HW)),          # 3x3 tap boundary masks
                full_spec((R, 9 * R)),          # fused phi_r weights
                full_spec((R, 9 * R)),          # fused transposed-conv weights
                full_spec((R, 45 * R)),         # fused m_GAN weights
                full_spec((R, 4)),              # [b_phi, b_gan, gscale_t, gscale_b]
                full_spec((R, R)),              # channel-0 selector
            ],
            out_specs=data_spec,
        ),
        compiler_params=pltpu.CompilerParams(
            dimension_semantics=("parallel",),   # shards over v7x's 2 TCs if G > 1
            vmem_limit_bytes=32 * 1024 * 1024,
        ),
    )(xb_f, obs_t, obs_b, msk_t, msk_b, tap_masks,
      phi_lhs, vjp_lhs, gan_lhs, consts, sel)
    return out.reshape(B, C, H, W)


# ----------------------------------------------------------------------------
# pure-JAX reference (lax.conv + jax.grad) mirroring the PyTorch semantics
# ----------------------------------------------------------------------------
def _reference_forward(xb, obs, mask, params):
    B, C, H, W = xb.shape
    dn = ('NCHW', 'OIHW', 'NCHW')
    w_phi, b_phi = params["w_phi"], params["b_phi"]
    w_gan, b_gan = params["w_gan"], params["b_gan"]
    alpha_obs, W_obs = params["alpha_obs"], params["W_obs"]

    def phi(x):
        return lax.conv_general_dilated(
            x, w_phi, (1, 1), 'SAME', dimension_numbers=dn
        ) + b_phi[None, :, None, None]

    pred = phi(xb)

    def loss_fn(x_):
        p_ = phi(x_)
        xcat_ = jnp.concatenate([x_, p_], axis=1)
        dy_ = (xcat_ - obs) * mask
        per_ch = jnp.sum(dy_ ** 2, axis=(0, 2, 3))
        return alpha_obs ** 2 * jnp.sum(per_ch * (W_obs[0] ** 2)) / (B * H * W)

    vgrad = jax.grad(loss_fn)(xb)                      # torch.autograd.grad analog

    xcat = jnp.concatenate([xb, pred], axis=1)
    dy = (xcat - obs) * mask
    obs2 = mask * obs + (1.0 - mask) * xcat
    gan_in = jnp.concatenate([xb, pred, obs2, vgrad], axis=1)
    x_inc = lax.conv_general_dilated(
        gan_in, w_gan, (1, 1), 'SAME', dimension_numbers=dn
    ) + b_gan[None, :, None, None]
    dy_s = jnp.sum(dy[:, 0] ** 2, axis=(1, 2))[:, None, None, None]
    nz = jnp.sum(mask[:, 0] != 0, axis=(1, 2)).astype(jnp.float32)[:, None, None, None]
    return xb + x_inc * dy_s / nz


if __name__ == "__main__":
    B, C, H, W = 2, 4, 16, 16
    key = jax.random.PRNGKey(0)
    k = jax.random.split(key, 8)

    xb = jax.random.normal(k[0], (B, C, H, W), jnp.float32)
    obs = jax.random.normal(k[1], (B, 2 * C, H, W), jnp.float32)
    mask = (jax.random.uniform(k[2], (B, 2 * C, H, W)) < 0.6).astype(jnp.float32)

    params = {
        # phi_r / m_GAN conv weights (deterministic synthetic init)
        "w_phi": 0.2 * jax.random.normal(k[3], (C, C, 3, 3), jnp.float32),
        "b_phi": 0.05 * jax.random.normal(k[4], (C,), jnp.float32),
        "w_gan": 0.1 * jax.random.normal(k[5], (C, 5 * C, 3, 3), jnp.float32),
        "b_gan": 0.05 * jax.random.normal(k[6], (C,), jnp.float32),
        # Model_Var_Cost.__init__ values (alphaObs=1, WObs=ones; alphaReg/WReg/
        # eps terms drop out because dx = xb - xb == 0 for the L2 norm)
        "alpha_obs": jnp.float32(1.0),
        "W_obs": jnp.ones((1, 2 * C), jnp.float32),
    }

    out = solver_4dvar_gan_forward(xb, obs, mask, params)
    out = jax.block_until_ready(out)

    ref = _reference_forward(xb, obs, mask, params)
    np.testing.assert_allclose(np.asarray(out), np.asarray(ref),
                               rtol=2e-3, atol=2e-3)
    print("KERNEL_OK")
</pallas_src>

<mosaic_0001>
module attributes {stable_mosaic.version = 11 : i64} {
  func.func @probe(%arg0: memref<8x128xf32, #tpu.memory_space<vmem>>, %arg1: memref<8x128xf32, #tpu.memory_space<vmem>>) attributes {dimension_semantics = [], scalar_prefetch = 0 : i64, scratch_operands = 0 : i64, tpu.core_type = #tpu.core_type<tc>} {
    %c0 = arith.constant 0 : index
    %c0_0 = arith.constant 0 : index
    %0 = vector.load %arg0[%c0, %c0_0] : memref<8x128xf32, #tpu.memory_space<vmem>>, vector<8x128xf32>
    %c1_i32 = arith.constant 1 : i32
    %1 = tpu.dynamic_rotate %0 by %c1_i32 dim 1 : vector<8x128xf32>, i32 -> vector<8x128xf32>
    %c0_1 = arith.constant 0 : index
    %c0_2 = arith.constant 0 : index
    %2 = vector.load %arg1[%c0_1, %c0_2] : memref<8x128xf32, #tpu.memory_space<vmem>>, vector<8x128xf32>
    tpu.vector_store %arg1[%c0_1, %c0_2], %1 {strides = array<i32>} : memref<8x128xf32, #tpu.memory_space<vmem>>, vector<8x128xf32>,
    return
  }
}

</mosaic_0001>

<bundles_post_ra>
// kernel: tpu_custom_call.1
= control target key start
LH: loop header
LB: loop body
LE: loop exit
PB: predicated region body
PF: predicated region fallthrough
CT: control target
= control target key end

     0   :  { %6 = vsyncpa [#allocation3], 0  ;;  %s128_s0 = inlined_call_operand.hbm [shape: f32[8,128], index: 0, kind: input, shape index: {}]   ;;  %s129_s1 = inlined_call_operand.hbm [shape: f32[8,128], index: 1, kind: output, shape index: {}]  }
   0x1   :  { %7 = vsyncpa [#allocation4], 0  ;;  %s91_s6 = smov [#allocation2]   ;;  %s43_s10 = scalar_lea.hbm %s128_s0, 128 }
   0x2   :  { %s14_s7 = sshll.u32 %s91_s6, 4  ;;  %p44_p0 = scmp.ne.s32.totalorder %s128_s0, %s43_s10  ;;  %s15_s7 = int_to_ptr.vmem [resolvable:$true] %s14_s7 }
   0x3   :  { %p47_p1 = scmp.lt.u32.totalorder %s43_s10, %s128_s0 }
   0x5   :  { %p49_p2 = pnand %p47_p1, %p44_p0 }
   0x7   :  { %52 = shalt.err (!%p49_p2)
}
   0x8   :  { %s53_s15 = scalar_lea.vmem %s15_s7, 128  ;;  %p58_p4 = scmp.lt.s32.totalorder %s15_s7, %s15_s7 }
   0x9   :  { %p54_p3 = scmp.ne.s32.totalorder %s15_s7, %s53_s15  ;;  %p59_p5 = scmp.lt.s32.totalorder %s53_s15, %s53_s15 }
   0xb   :  { %p60_p6 = por %p59_p5, %p58_p4 }
   0xd   :  { %p61_p7 = pnand %p60_p6, %p54_p3 }
   0xf   :  { %64 = shalt.err (!%p61_p7)
}
  0x10   :  { %17 = dma.hbm_to_vmem [thread:$0]  %s128_s0, 128, %s15_s7, [#allocation3]  }
  0x11   :  { %87 = dma.done.wait [#allocation3], 128  }
  0x12   :  { %88 = vsyncadd [#allocation3], 4294967168  ;;  %v21_v0 = vld [vmem:[#allocation2] sm:$0xff]  ;;  %s92_s18 = smov 1   ;;  %s93_s19 = smov [#allocation5]  }
  0x13   :  { %22 = vrot.lane.b32.xlu0 %v21_v0, %s92_s18  ;;  %s31_s20 = sshll.u32 %s93_s19, 4  ;;  %s32_s20 = int_to_ptr.vmem [resolvable:$true] %s31_s20 }
  0x14   :  { %s65_s21 = scalar_lea.vmem %s32_s20, 128  ;;  %p70_p9 = scmp.lt.s32.totalorder %s32_s20, %s32_s20 }
  0x15   :  { %p66_p8 = scmp.ne.s32.totalorder %s32_s20, %s65_s21  ;;  %p71_p10 = scmp.lt.s32.totalorder %s65_s21, %s65_s21 }
  0x17   :  { %p72_p11 = por %p71_p10, %p70_p9 }
  0x19   :  { %p73_p12 = pnand %p72_p11, %p66_p8 }
  0x85   :  { %v23_v1 = vpop.permute.xlu0 %22 }
  0x86   :  { %24 = vst [vmem:[#allocation5] sm:$0xff] %v23_v1 }
  0x87   :  { %76 = shalt.err (!%p73_p12)
}
  0x88   :  { %s77_s0 = scalar_lea.hbm %s129_s1, 128 }
  0x89   :  { %p78_p13 = scmp.ne.s32.totalorder %s129_s1, %s77_s0  ;;  %p81_p0 = scmp.lt.u32.totalorder %s77_s0, %s129_s1 }
  0x8b   :  { %p83_p1 = pnand %p81_p0, %p78_p13 }
  0x8d   :  { %86 = shalt.err (!%p83_p1)
}
  0x8e   :  { %34 = dma.vmem_to_hbm [thread:$0]  %s32_s20, 128, %s129_s1, [#allocation4]  }
  0x8f   :  { %89 = dma.done.wait [#allocation4], 128  }
  0x90   :  { %90 = vsyncadd [#allocation4], 4294967168 }
  0x91   :  { %38 = vsyncpa [#allocation3], 1 }
  0x92   :  { %39 = vsyncpa [#allocation4], 1 }

</bundles_post_ra>
